<compile_context>
chip_gen: v7x
topology: tpu7x:2x2x1
jax: 0.10.0
libtpu: 0.0.40
codegen_flags: <defaults>
</compile_context>

<pallas_src>
import jax
import jax.numpy as jnp
from jax import lax
from jax.experimental import pallas as pl
from jax.experimental.pallas import tpu as pltpu

SMOOTH = 1e-05
_LANES = 128
_SUBLANES = 8
_GROUP = 8          # lane-chunks per SSA-partial group before flushing to VMEM


def _round_up(x, m):
    return ((x + m - 1) // m) * m


def _make_dice_rows_kernel(thw, hw):
    """Build the kernel for a static HW tile width `thw` and true HW extent `hw`.

    Grid = (nc_tiles, hw_tiles); HW (reduction) axis is last / 'arbitrary'.
      pred_ref / target_ref : (TNC, THW) tiles of the flattened (NC, HW) inputs.
      dice_ref              : (TNC, 1) per-row dice, written on the last HW step.
      inter_acc / denom_acc : (TNC, cw) f32 lane-dense accumulators (VMEM scratch).

    Returns (kernel, cw) where cw is the lane-chunk / accumulator width.
    """
    cw = _LANES if thw >= _LANES else thw   # chunk width (lane-aligned)
    nchunks = thw // cw                     # chunks in a fully-valid tile
    hw_rem = hw % thw                       # valid cols in the ragged last tile (0 => none)
    rem_full = hw_rem // cw                 # fully-valid chunks in that ragged tile
    rem_lanes = hw_rem % cw                 # valid lanes of its partial chunk

    def _accum_chunk(pred_ref, target_ref, j, inter_p, denom_p, n_valid=None):
        # j is a Python int -> static, lane-aligned slice (no dynamic lane offsets).
        sl = pl.ds(j * cw, cw)
        ps = pred_ref[:, sl].astype(jnp.float32)
        ts = target_ref[:, sl].astype(jnp.float32)
        if n_valid is not None and n_valid < cw:
            # Ragged tail chunk: zero the out-of-bounds lanes (garbage may be
            # NaN/Inf, so use a select, not a multiply).
            lane = lax.broadcasted_iota(jnp.int32, (1, cw), 1)
            valid = lane < n_valid
            ps = jnp.where(valid, ps, 0.0)
            ts = jnp.where(valid, ts, 0.0)
        return inter_p + ps * ts, denom_p + (ps + ts)

    def _accum_chunks(pred_ref, target_ref, inter_acc, denom_acc, n_chunks,
                      tail_lanes=0):
        """Accumulate chunks [0, n_chunks) plus an optional masked tail chunk.

        SSA partials are flushed into the VMEM accumulators every _GROUP chunks
        so the live vreg set stays at ~2x8 partial vregs + in-flight loads.
        """
        tnc = inter_acc.shape[0]
        for g0 in range(0, n_chunks, _GROUP):
            inter_p = jnp.zeros((tnc, cw), jnp.float32)
            denom_p = jnp.zeros((tnc, cw), jnp.float32)
            for j in range(g0, min(g0 + _GROUP, n_chunks)):
                inter_p, denom_p = _accum_chunk(
                    pred_ref, target_ref, j, inter_p, denom_p)
            inter_acc[...] += inter_p
            denom_acc[...] += denom_p
        if tail_lanes > 0:
            inter_p = jnp.zeros((tnc, cw), jnp.float32)
            denom_p = jnp.zeros((tnc, cw), jnp.float32)
            inter_p, denom_p = _accum_chunk(
                pred_ref, target_ref, n_chunks, inter_p, denom_p, tail_lanes)
            inter_acc[...] += inter_p
            denom_acc[...] += denom_p

    def kernel(pred_ref, target_ref, dice_ref, inter_acc, denom_acc):
        k = pl.program_id(1)
        last = pl.num_programs(1) - 1

        @pl.when(k == 0)
        def _():
            inter_acc[...] = jnp.zeros_like(inter_acc)
            denom_acc[...] = jnp.zeros_like(denom_acc)

        if hw_rem == 0:
            # HW divides evenly into tiles: every tile is fully valid, no mask.
            _accum_chunks(pred_ref, target_ref, inter_acc, denom_acc, nchunks)
        else:
            @pl.when(k != last)
            def _():
                _accum_chunks(pred_ref, target_ref, inter_acc, denom_acc, nchunks)

            @pl.when(k == last)
            def _():
                # Ragged last tile: rem_full full chunks + one masked chunk.
                _accum_chunks(pred_ref, target_ref, inter_acc, denom_acc,
                              rem_full, tail_lanes=rem_lanes)

        @pl.when(k == last)
        def _():
            # Single cross-lane (XLU) reduce + exact divide, once per NC tile.
            inter = jnp.sum(inter_acc[...], axis=1, keepdims=True)   # (TNC, 1)
            denom = jnp.sum(denom_acc[...], axis=1, keepdims=True)   # (TNC, 1)
            dice_ref[...] = (2.0 * inter + SMOOTH) / (denom + SMOOTH)

    return kernel, cw


def dice_loss(pred, target, *, tnc_target=64, thw_target=16384,
              vmem_limit_bytes=32 * 1024 * 1024):
    """pred, target: (N, C, H, W) arrays (any float/int dtype). Returns f32 scalar."""
    assert pred.shape == target.shape and pred.ndim == 4
    n, c, h, w = pred.shape
    nc, hw = n * c, h * w

    # Flatten NCHW -> (NC, HW); free for contiguous inputs, native dtype on the
    # wire (upcast to f32 happens per chunk inside the kernel).
    pred2d = pred.reshape(nc, hw)
    target2d = target.reshape(nc, hw)

    # HW tile: largest multiple of 128 <= min(hw, thw_target); the ragged tail
    # is masked in-kernel.  If HW < 128 the block spans the full HW extent
    # (always a legal block shape).
    if hw >= _LANES:
        thw = min(thw_target, (hw // _LANES) * _LANES)
    else:
        thw = hw

    # NC tile: aim for >= 2 NC tiles (keeps both v7x TensorCores fed) while
    # keeping the f32 partial accumulators at 8 vregs (TNC <= 64).  Fall back
    # to the full NC extent when NC is small (always a legal block shape);
    # ragged NC tail rows are dropped by the partial output DMA.
    tnc = min(tnc_target, _round_up(pl.cdiv(nc, 2), _SUBLANES))
    if tnc >= nc:
        tnc = nc
    # TODO(synk): for tiny NC on v7x, a 2-way 'parallel' HW split with two
    # partial (inter, denom) outputs combined in the XLA epilogue would keep
    # the second TensorCore busy; not implemented here.

    kernel, cw = _make_dice_rows_kernel(thw=thw, hw=hw)
    grid = (pl.cdiv(nc, tnc), pl.cdiv(hw, thw))

    dice = pl.pallas_call(
        kernel,
        out_shape=jax.ShapeDtypeStruct((nc, 1), jnp.float32),
        grid_spec=pltpu.PrefetchScalarGridSpec(
            num_scalar_prefetch=0,
            grid=grid,
            in_specs=[
                pl.BlockSpec((tnc, thw), lambda i, k: (i, k)),
                pl.BlockSpec((tnc, thw), lambda i, k: (i, k)),
            ],
            out_specs=pl.BlockSpec((tnc, 1), lambda i, k: (i, 0)),
            scratch_shapes=[
                pltpu.VMEM((tnc, cw), jnp.float32),
                pltpu.VMEM((tnc, cw), jnp.float32),
            ],
        ),
        compiler_params=pltpu.CompilerParams(
            dimension_semantics=("parallel", "arbitrary"),
            vmem_limit_bytes=vmem_limit_bytes,
        ),
    )(pred2d, target2d)

    # Tiny epilogue in XLA: mean over the true (N*C) rows, loss = 1 - mean.
    return 1.0 - jnp.mean(dice)


def _dice_loss_ref(pred, target):
    pred = pred.astype(jnp.float32)
    target = target.astype(jnp.float32)
    inter = jnp.sum(pred * target, axis=(2, 3))
    dice = (2.0 * inter + SMOOTH) / (
        jnp.sum(pred, axis=(2, 3)) + jnp.sum(target, axis=(2, 3)) + SMOOTH
    )
    return 1.0 - jnp.mean(dice)


if __name__ == "__main__":
    key = jax.random.PRNGKey(0)
    k1, k2, k3, k4 = jax.random.split(key, 4)

    # Primary shape from the module spec: NCHW segmentation-style inputs.
    N, C, H, W = 2, 4, 16, 16
    pred = jax.nn.sigmoid(jax.random.normal(k1, (N, C, H, W), jnp.float32))
    target = (jax.random.uniform(k2, (N, C, H, W), jnp.float32) > 0.5).astype(
        jnp.float32
    )

    loss = dice_loss(pred, target)
    jax.block_until_ready(loss)
    ref = _dice_loss_ref(pred, target)
    assert jnp.allclose(loss, ref, atol=1e-5, rtol=1e-5), (loss, ref)

    # Ragged shape + bf16 predictions: exercises the in-kernel HW tail mask,
    # the ragged NC output block, and native-dtype streaming / f32 accumulate.
    N2, C2, H2, W2 = 2, 3, 17, 19
    pred2 = jax.nn.sigmoid(
        jax.random.normal(k3, (N2, C2, H2, W2), jnp.float32)
    ).astype(jnp.bfloat16)
    target2 = (jax.random.uniform(k4, (N2, C2, H2, W2), jnp.float32) > 0.5).astype(
        jnp.float32
    )
    loss2 = dice_loss(pred2, target2)
    jax.block_until_ready(loss2)
    ref2 = _dice_loss_ref(pred2, target2)
    assert jnp.allclose(loss2, ref2, atol=5e-3, rtol=5e-3), (loss2, ref2)

    print("KERNEL_OK")
</pallas_src>

<mosaic_0001>
module attributes {stable_mosaic.version = 11 : i64} {
  func.func @kernel(%arg0: i32, %arg1: i32, %arg2: memref<8x256xf32, #tpu.memory_space<vmem>>, %arg3: memref<8x256xf32, #tpu.memory_space<vmem>>, %arg4: memref<8x1xf32, #tpu.memory_space<vmem>>, %arg5: memref<8x128xf32, #tpu.memory_space<vmem>>, %arg6: memref<8x128xf32, #tpu.memory_space<vmem>>) attributes {dimension_semantics = [#tpu.dimension_semantics<parallel>, #tpu.dimension_semantics<arbitrary>], iteration_bounds = array<i64: 1, 1>, scalar_prefetch = 0 : i64, scratch_operands = 2 : i64, tpu.core_type = #tpu.core_type<tc>, window_params = [{transform_indices = @transform_0, window_bounds = array<i64: 8, 256>}, {transform_indices = @transform_1, window_bounds = array<i64: 8, 256>}, {transform_indices = @transform_2, window_bounds = array<i64: 8, 1>}]} {
    %c0_i32 = arith.constant 0 : i32
    %0 = arith.cmpi eq, %arg1, %c0_i32 : i32
    %1 = arith.extui %0 : i1 to i32
    %c0_i32_0 = arith.constant 0 : i32
    %2 = arith.cmpi ne, %1, %c0_i32_0 : i32
    scf.if %2 {
      %cst_18 = arith.constant 0.000000e+00 : f32
      %26 = vector.broadcast %cst_18 : f32 to vector<8x128xf32>
      %c0_19 = arith.constant 0 : index
      %c0_20 = arith.constant 0 : index
      %27 = vector.load %arg5[%c0_19, %c0_20] : memref<8x128xf32, #tpu.memory_space<vmem>>, vector<8x128xf32>
      tpu.vector_store %arg5[%c0_19, %c0_20], %26 {strides = array<i32>} : memref<8x128xf32, #tpu.memory_space<vmem>>, vector<8x128xf32>,
      %cst_21 = arith.constant 0.000000e+00 : f32
      %28 = vector.broadcast %cst_21 : f32 to vector<8x128xf32>
      %c0_22 = arith.constant 0 : index
      %c0_23 = arith.constant 0 : index
      %29 = vector.load %arg6[%c0_22, %c0_23] : memref<8x128xf32, #tpu.memory_space<vmem>>, vector<8x128xf32>
      tpu.vector_store %arg6[%c0_22, %c0_23], %28 {strides = array<i32>} : memref<8x128xf32, #tpu.memory_space<vmem>>, vector<8x128xf32>,
    } else {
    }
    %cst = arith.constant 0.000000e+00 : f32
    %3 = vector.broadcast %cst : f32 to vector<8x128xf32>
    %cst_1 = arith.constant 0.000000e+00 : f32
    %4 = vector.broadcast %cst_1 : f32 to vector<8x128xf32>
    %c0 = arith.constant 0 : index
    %c0_2 = arith.constant 0 : index
    %5 = vector.load %arg2[%c0, %c0_2] : memref<8x256xf32, #tpu.memory_space<vmem>>, vector<8x128xf32>
    %c0_3 = arith.constant 0 : index
    %c0_4 = arith.constant 0 : index
    %6 = vector.load %arg3[%c0_3, %c0_4] : memref<8x256xf32, #tpu.memory_space<vmem>>, vector<8x128xf32>
    %7 = arith.mulf %5, %6 : vector<8x128xf32>
    %8 = arith.addf %3, %7 : vector<8x128xf32>
    %9 = arith.addf %5, %6 : vector<8x128xf32>
    %10 = arith.addf %4, %9 : vector<8x128xf32>
    %c0_5 = arith.constant 0 : index
    %c128 = arith.constant 128 : index
    %11 = vector.load %arg2[%c0_5, %c128] : memref<8x256xf32, #tpu.memory_space<vmem>>, vector<8x128xf32>
    %c0_6 = arith.constant 0 : index
    %c128_7 = arith.constant 128 : index
    %12 = vector.load %arg3[%c0_6, %c128_7] : memref<8x256xf32, #tpu.memory_space<vmem>>, vector<8x128xf32>
    %13 = arith.mulf %11, %12 : vector<8x128xf32>
    %14 = arith.addf %8, %13 : vector<8x128xf32>
    %15 = arith.addf %11, %12 : vector<8x128xf32>
    %16 = arith.addf %10, %15 : vector<8x128xf32>
    %c0_8 = arith.constant 0 : index
    %c0_9 = arith.constant 0 : index
    %17 = vector.load %arg5[%c0_8, %c0_9] : memref<8x128xf32, #tpu.memory_space<vmem>>, vector<8x128xf32>
    %18 = arith.addf %17, %14 : vector<8x128xf32>
    %c0_10 = arith.constant 0 : index
    %c0_11 = arith.constant 0 : index
    %19 = vector.load %arg5[%c0_10, %c0_11] : memref<8x128xf32, #tpu.memory_space<vmem>>, vector<8x128xf32>
    tpu.vector_store %arg5[%c0_10, %c0_11], %18 {strides = array<i32>} : memref<8x128xf32, #tpu.memory_space<vmem>>, vector<8x128xf32>,
    %c0_12 = arith.constant 0 : index
    %c0_13 = arith.constant 0 : index
    %20 = vector.load %arg6[%c0_12, %c0_13] : memref<8x128xf32, #tpu.memory_space<vmem>>, vector<8x128xf32>
    %21 = arith.addf %20, %16 : vector<8x128xf32>
    %c0_14 = arith.constant 0 : index
    %c0_15 = arith.constant 0 : index
    %22 = vector.load %arg6[%c0_14, %c0_15] : memref<8x128xf32, #tpu.memory_space<vmem>>, vector<8x128xf32>
    tpu.vector_store %arg6[%c0_14, %c0_15], %21 {strides = array<i32>} : memref<8x128xf32, #tpu.memory_space<vmem>>, vector<8x128xf32>,
    %c0_i32_16 = arith.constant 0 : i32
    %23 = arith.cmpi eq, %arg1, %c0_i32_16 : i32
    %24 = arith.extui %23 : i1 to i32
    %c0_i32_17 = arith.constant 0 : i32
    %25 = arith.cmpi ne, %24, %c0_i32_17 : i32
    scf.if %25 {
      %c0_18 = arith.constant 0 : index
      %c0_19 = arith.constant 0 : index
      %26 = vector.load %arg5[%c0_18, %c0_19] : memref<8x128xf32, #tpu.memory_space<vmem>>, vector<8x128xf32>
      %cst_20 = arith.constant dense<0.000000e+00> : vector<8xf32>
      %27 = vector.multi_reduction <add>, %26, %cst_20 [1] : vector<8x128xf32> to vector<8xf32>
      %28 = vector.shape_cast %27 : vector<8xf32> to vector<8x1xf32>
      %c0_21 = arith.constant 0 : index
      %c0_22 = arith.constant 0 : index
      %29 = vector.load %arg6[%c0_21, %c0_22] : memref<8x128xf32, #tpu.memory_space<vmem>>, vector<8x128xf32>
      %cst_23 = arith.constant dense<0.000000e+00> : vector<8xf32>
      %30 = vector.multi_reduction <add>, %29, %cst_23 [1] : vector<8x128xf32> to vector<8xf32>
      %31 = vector.shape_cast %30 : vector<8xf32> to vector<8x1xf32>
      %cst_24 = arith.constant 2.000000e+00 : f32
      %32 = vector.broadcast %cst_24 : f32 to vector<8x1xf32>
      %33 = arith.mulf %32, %28 : vector<8x1xf32>
      %cst_25 = arith.constant 9.99999974E-6 : f32
      %34 = vector.broadcast %cst_25 : f32 to vector<8x1xf32>
      %35 = arith.addf %33, %34 : vector<8x1xf32>
      %cst_26 = arith.constant 9.99999974E-6 : f32
      %36 = vector.broadcast %cst_26 : f32 to vector<8x1xf32>
      %37 = arith.addf %31, %36 : vector<8x1xf32>
      %38 = arith.divf %35, %37 : vector<8x1xf32>
      %c0_27 = arith.constant 0 : index
      %c0_28 = arith.constant 0 : index
      %39 = vector.load %arg4[%c0_27, %c0_28] : memref<8x1xf32, #tpu.memory_space<vmem>>, vector<8x1xf32>
      tpu.vector_store %arg4[%c0_27, %c0_28], %38 {strides = array<i32>} : memref<8x1xf32, #tpu.memory_space<vmem>>, vector<8x1xf32>,
    } else {
    }
    return
  }
  func.func @transform_0(%arg0: i32, %arg1: i32) -> (i32, i32) {
    %c0_i32 = arith.constant 0 : i32
    return %arg0, %arg1 : i32, i32
  }
  func.func @transform_1(%arg0: i32, %arg1: i32) -> (i32, i32) {
    %c0_i32 = arith.constant 0 : i32
    return %arg0, %arg1 : i32, i32
  }
  func.func @transform_2(%arg0: i32, %arg1: i32) -> (i32, i32) {
    %c0_i32 = arith.constant 0 : i32
    %c0_i32_0 = arith.constant 0 : i32
    return %arg0, %c0_i32 : i32, i32
  }
}

</mosaic_0001>

<bundles_post_ra>
// kernel: tpu_custom_call.1
= control target key start
LH: loop header
LB: loop body
LE: loop exit
PB: predicated region body
PF: predicated region fallthrough
CT: control target
= control target key end

     0   :  { %7 = vsyncpa [#allocation5], 0  ;;  %s177_s0 = inlined_call_operand.hbm [shape: f32[8,256], index: 0, kind: input, shape index: {}]   ;;  %s178_s1 = inlined_call_operand.hbm [shape: f32[8,256], index: 1, kind: input, shape index: {}]   ;;  %s179_s2 = inlined_call_operand.vmem [shape: f32[8,1], index: 2, kind: output, shape index: {}]  }
   0x1   :  { %8 = vsyncpa [#allocation7], 0  ;;  %s133_s9 = smov [#allocation4]   ;;  %s134_s11 = smov [#allocation6]  }
   0x2   :  { %s15_s10 = sshll.u32 %s133_s9, 4  ;;  %s25_s12 = sshll.u32 %s134_s11, 4  ;;  %s16_s10 = int_to_ptr.vmem [resolvable:$true] %s15_s10  ;;  %s26_s12 = int_to_ptr.vmem [resolvable:$true] %s25_s12 }
   0x3   :  { %s85_s15 = scalar_lea.hbm %s177_s0, 256 }
   0x4   :  { %p86_p0 = scmp.ne.s32.totalorder %s177_s0, %s85_s15  ;;  %p89_p1 = scmp.lt.u32.totalorder %s85_s15, %s177_s0 }
   0x6   :  { %p91_p2 = pnand %p89_p1, %p86_p0 }
   0x8   :  { %94 = shalt.err (!%p91_p2)
}
   0x9   :  { %s95_s20 = scalar_lea.vmem %s16_s10, 256  ;;  %p100_p4 = scmp.lt.s32.totalorder %s16_s10, %s16_s10 }
   0xa   :  { %p96_p3 = scmp.ne.s32.totalorder %s16_s10, %s95_s20  ;;  %p101_p5 = scmp.lt.s32.totalorder %s95_s20, %s95_s20 }
   0xc   :  { %p102_p6 = por %p101_p5, %p100_p4 }
   0xe   :  { %p103_p7 = pnand %p102_p6, %p96_p3 }
  0x10   :  { %106 = shalt.err (!%p103_p7)
}
  0x11   :  { %18 = dma.hbm_to_vmem [thread:$0]  %s177_s0, 256, %s16_s10, [#allocation5]  }
  0x12   :  { %s107_s25 = scalar_lea.hbm %s178_s1, 256 }
  0x13   :  { %p108_p8 = scmp.ne.s32.totalorder %s178_s1, %s107_s25  ;;  %p111_p9 = scmp.lt.u32.totalorder %s107_s25, %s178_s1 }
  0x15   :  { %p113_p10 = pnand %p111_p9, %p108_p8 }
  0x17   :  { %116 = shalt.err (!%p113_p10)
}
  0x18   :  { %s117_s30 = scalar_lea.vmem %s26_s12, 256  ;;  %p122_p12 = scmp.lt.s32.totalorder %s26_s12, %s26_s12 }
  0x19   :  { %p118_p11 = scmp.ne.s32.totalorder %s26_s12, %s117_s30  ;;  %p123_p13 = scmp.lt.s32.totalorder %s117_s30, %s117_s30 }
  0x1b   :  { %p124_p0 = por %p123_p13, %p122_p12 }
  0x1d   :  { %p125_p1 = pnand %p124_p0, %p118_p11 }
  0x1f   :  { %128 = shalt.err (!%p125_p1)
}
  0x20   :  { %28 = dma.hbm_to_vmem [thread:$0]  %s178_s1, 256, %s26_s12, [#allocation7]  }
  0x21   :  { %129 = dma.done.wait [#allocation5], 256  }
  0x22   :  { %130 = vsyncadd [#allocation5], 4294967040 }
  0x23   :  { %131 = dma.done.wait [#allocation7], 256  }
  0x24   :  { %132 = vsyncadd [#allocation7], 4294967040  ;;  %v41_v0 = vld [vmem:[#allocation4] sm:$0xff]  ;;  %v42_v1 = vld [vmem:[#allocation6] sm:$0xff]  ;;  %vm73_vm0 = vcmask 7168  }
  0x25   :  { %v47_v2 = vld [vmem:[#allocation4 + $0x8] sm:$0xff]  ;;  %v45_v3 = vadd.f32 %v42_v1, %v41_v0  ;;  %v48_v4 = vld [vmem:[#allocation6 + $0x8] sm:$0xff]  ;;  %v43_v6 = vmul.f32 %v42_v1, %v41_v0 }
  0x26   :  { %v51_v5 = vadd.f32 %v48_v4, %v47_v2  ;;  %v49_v7 = vmul.f32 %v48_v4, %v47_v2 }
  0x28   :  { %v52_v8 = vadd.f32 %v51_v5, %v45_v3  ;;  %v50_v9 = vadd.f32 %v49_v7, %v43_v6 }
  0x2a   :  { %66 = vadd.xlane.f32.xlu0 %v52_v8 }
  0x2e   :  { %63 = vadd.xlane.f32.xlu0 %v50_v9 }
  0xb7   :  { %v67_v10 = vpop.xlane.xlu0 %66 }
  0xb8   :  { %v70_v11 = vadd.f32 1e-05, %v67_v10 }
  0xba   :  { %83 = vrcp.f32 %v70_v11 }
  0xbb   :  { %v64_v12 = vpop.xlane.xlu0 %63 }
  0xbc   :  { %v68_v13 = vmul.f32 2.0, %v64_v12 }
  0xbe   :  { %v69_v14 = vadd.f32 1e-05, %v68_v13 }
  0xc4   :  { %v84_v15 = vpop.eup %83 }
  0xc5   :  { %v72_v16 = vmul.f32 %v84_v15, %v69_v14 }
  0xc7   :  { %74 = vst.msk [vmem:[%s179_s2] sm:$0xff] %vm73_vm0, %v72_v16 }
  0xc8   :  { %79 = vsyncpa [#allocation5], 1 }
  0xc9   :  { %80 = vsyncpa [#allocation7], 1 }

</bundles_post_ra>
